<compile_context>
chip_gen: v7x
topology: tpu7x:2x2x1
jax: 0.10.0
libtpu: 0.0.40
codegen_flags: <defaults>
</compile_context>

<pallas_src>
import functools
import math

import jax
import jax.numpy as jnp
from jax import lax
from jax.experimental import pallas as pl
from jax.experimental.pallas import tpu as pltpu


# ------------------------------ fused kernel --------------------------------

def _mha_body(q_ref, k_ref, v_ref, w_ref, b_ref, o_ref, acc_ref, mask, *,
              n_heads):
    """Fused QKV projection + multi-head attention + WO projection, one batch.

    w_ref: (4, D, D) bf16 stack [Wq^T * 1/sqrt(Dh), Wk^T, Wv^T, Wo^T]
    b_ref: (4, 1, D) f32  stack [bq  * 1/sqrt(Dh), bk,   bv,   bo ]
    acc_ref: (S, D) f32 VMEM slab collecting per-head outputs.
    """
    bf16 = jnp.bfloat16
    xq = q_ref[0].astype(bf16)          # (S, D)
    xk = k_ref[0].astype(bf16)
    xv = v_ref[0].astype(bf16)

    # Full-width (S,D)@(D,D) projections: 3 MXU matmuls with full lane
    # occupancy instead of 3*H narrow (D,Dh) ones; scale folded into index 0.
    q_all = jnp.dot(xq, w_ref[0], preferred_element_type=jnp.float32) + b_ref[0]
    k_all = jnp.dot(xk, w_ref[1], preferred_element_type=jnp.float32) + b_ref[1]
    v_all = jnp.dot(xv, w_ref[2], preferred_element_type=jnp.float32) + b_ref[2]

    # Hoist the mask compare out of the per-head loop (one compare, H selects).
    masked = None if mask is None else (mask == 0)

    S, D = q_all.shape
    Dh = D // n_heads
    # Static unroll: per-head body is now tiny (2 matmuls + softmax), so vreg
    # pressure stays low even when unrolled.
    for h in range(n_heads):
        lo = h * Dh
        qh = q_all[:, lo:lo + Dh].astype(bf16)
        kh = k_all[:, lo:lo + Dh].astype(bf16)
        vh = v_all[:, lo:lo + Dh].astype(bf16)

        # scores = qh @ kh^T without an explicit transpose: contract last dims.
        # (scale is already baked into q_all)
        s = lax.dot_general(
            qh, kh, dimension_numbers=(((1,), (1,)), ((), ())),
            preferred_element_type=jnp.float32)
        if masked is not None:
            # exact masked_fill(mask == 0, -1e9) semantics, compare hoisted
            s = jnp.where(masked, jnp.float32(-1e9), s)

        # numerically-stable softmax in f32; reciprocal on the EUP (approx).
        s = s - jnp.max(s, axis=-1, keepdims=True)
        p = jnp.exp(s)
        p = p * pl.reciprocal(jnp.sum(p, axis=-1, keepdims=True), approx=True)
        # TODO(synk): nn.Dropout(0.1) on p_attn is identity in eval mode; skipped.

        oh = jnp.dot(p.astype(bf16), vh, preferred_element_type=jnp.float32)
        acc_ref[:, lo:lo + Dh] = oh       # build the lane-contiguous (S, D) slab

    # One full-width WO matmul (contraction depth D) + a single bias add.
    out = jnp.dot(acc_ref[...].astype(bf16), w_ref[3],
                  preferred_element_type=jnp.float32) + b_ref[3]
    o_ref[0] = out                        # single lane-dense (S, D) store


def mha_kernel(q_ref, k_ref, v_ref, w_ref, b_ref, o_ref, acc_ref, *, n_heads):
    _mha_body(q_ref, k_ref, v_ref, w_ref, b_ref, o_ref, acc_ref, None,
              n_heads=n_heads)


def mha_kernel_masked(q_ref, k_ref, v_ref, w_ref, b_ref, m_ref, o_ref, acc_ref,
                      *, n_heads):
    _mha_body(q_ref, k_ref, v_ref, w_ref, b_ref, o_ref, acc_ref, m_ref[0],
              n_heads=n_heads)


# ------------------------------ module wrapper -------------------------------

def _pack_params(params):
    """Host-side, one-time packing: x @ W^T layout, softmax scale folded into Q."""
    H = params["n_heads"]
    D = params["WQ_w"].shape[0]
    Dh = D // H
    scale = 1.0 / math.sqrt(Dh)           # torch: scores / np.sqrt(K.size(-1))

    w = jnp.stack([params["WQ_w"].T * scale,     # scale folded into Q weight...
                   params["WK_w"].T,
                   params["WV_w"].T,
                   params["WO_w"].T]).astype(jnp.bfloat16)          # (4, D, D)
    b = jnp.stack([params["WQ_b"] * scale,       # ...and into the Q bias
                   params["WK_b"],
                   params["WV_b"],
                   params["WO_b"]]).reshape(4, 1, D).astype(jnp.float32)  # (4,1,D)
    return w, b


def multihead_attn_forward(params, Q, K, V, mask=None):
    B, S, D = Q.shape
    H = params["n_heads"]

    w, b = _pack_params(params)

    bsd_spec = pl.BlockSpec((1, S, D), lambda i: (i, 0, 0))
    in_specs = [
        bsd_spec, bsd_spec, bsd_spec,
        pl.BlockSpec((4, D, D), lambda i: (0, 0, 0)),
        pl.BlockSpec((4, 1, D), lambda i: (0, 0, 0)),
    ]
    # Accept activations in the caller's dtype (bf16 passes through untouched;
    # f32 is cast to bf16 inside the kernel right before the MXU).
    inputs = [Q, K, V, w, b]

    if mask is None:
        kernel = functools.partial(mha_kernel, n_heads=H)
    else:
        kernel = functools.partial(mha_kernel_masked, n_heads=H)
        inputs.append(jnp.asarray(mask, jnp.float32))
        in_specs.append(pl.BlockSpec((1, S, S), lambda i: (i, 0, 0)))

    return pl.pallas_call(
        kernel,
        out_shape=jax.ShapeDtypeStruct((B, S, D), jnp.float32),
        grid=(B,),
        in_specs=in_specs,
        out_specs=bsd_spec,
        scratch_shapes=[pltpu.VMEM((S, D), jnp.float32)],
        compiler_params=pltpu.CompilerParams(
            dimension_semantics=("parallel",)),
    )(*inputs)


# ---------------------------- params / reference -----------------------------

def init_params(key, n_heads, input_dim):
    """Deterministic nn.Linear-style init: U(-1/sqrt(fan_in), 1/sqrt(fan_in))."""
    params = {"n_heads": n_heads}
    bound = 1.0 / math.sqrt(input_dim)
    names = ["WQ", "WK", "WV", "WO"]
    keys = jax.random.split(key, 2 * len(names))
    for i, name in enumerate(names):
        params[f"{name}_w"] = jax.random.uniform(
            keys[2 * i], (input_dim, input_dim), jnp.float32, -bound, bound)
        params[f"{name}_b"] = jax.random.uniform(
            keys[2 * i + 1], (input_dim,), jnp.float32, -bound, bound)
    return params


def reference_forward(params, Q, K, V, mask=None):
    """Plain-JAX (f32) mirror of the PyTorch module in eval mode."""
    B, S, D = Q.shape
    H = params["n_heads"]
    Dh = D // H

    def lin(x, w, bias):
        return x @ w.T + bias

    q = lin(Q, params["WQ_w"], params["WQ_b"]).reshape(B, S, H, Dh).transpose(0, 2, 1, 3)
    k = lin(K, params["WK_w"], params["WK_b"]).reshape(B, S, H, Dh).transpose(0, 2, 1, 3)
    v = lin(V, params["WV_w"], params["WV_b"]).reshape(B, S, H, Dh).transpose(0, 2, 1, 3)

    scores = jnp.einsum("bhqd,bhkd->bhqk", q, k) / math.sqrt(Dh)
    if mask is not None:
        scores = jnp.where(mask[:, None] == 0, -1e9, scores)
    p = jax.nn.softmax(scores, axis=-1)
    out = jnp.einsum("bhqk,bhkd->bhqd", p, v)
    out = out.transpose(0, 2, 1, 3).reshape(B, S, D)
    return lin(out, params["WO_w"], params["WO_b"])


# ----------------------------------- main ------------------------------------

if __name__ == "__main__":
    B, S, H, D = 2, 8, 4, 32   # batch, seq, heads, input_dim (D % H == 0)

    root = jax.random.PRNGKey(0)
    kp, kq, kk, kv = jax.random.split(root, 4)

    params = init_params(kp, H, D)
    Q = jax.random.normal(kq, (B, S, D), jnp.float32)
    K = jax.random.normal(kk, (B, S, D), jnp.float32)
    V = jax.random.normal(kv, (B, S, D), jnp.float32)

    # no-mask path (mask-free kernel variant: no (B,S,S) mask DMA at all)
    out = jax.block_until_ready(multihead_attn_forward(params, Q, K, V, mask=None))
    ref = reference_forward(params, Q, K, V, mask=None)
    assert out.shape == (B, S, D)
    assert jnp.allclose(out, ref, atol=2e-2, rtol=2e-2), (
        f"no-mask mismatch: max abs err {jnp.max(jnp.abs(out - ref)):.4e}")

    # masked path (causal mask, broadcast over heads like torch's unsqueeze(1))
    mask = jnp.broadcast_to(jnp.tril(jnp.ones((S, S), jnp.float32)), (B, S, S))
    out_m = jax.block_until_ready(multihead_attn_forward(params, Q, K, V, mask=mask))
    ref_m = reference_forward(params, Q, K, V, mask=mask)
    assert jnp.allclose(out_m, ref_m, atol=2e-2, rtol=2e-2), (
        f"masked mismatch: max abs err {jnp.max(jnp.abs(out_m - ref_m)):.4e}")

    print("KERNEL_OK")
</pallas_src>

<mosaic_0001>
module attributes {stable_mosaic.version = 11 : i64} {
  func.func @mha_kernel(%arg0: i32, %arg1: memref<1x8x32xf32, #tpu.memory_space<vmem>>, %arg2: memref<1x8x32xf32, #tpu.memory_space<vmem>>, %arg3: memref<1x8x32xf32, #tpu.memory_space<vmem>>, %arg4: memref<4x32x32xbf16, #tpu.memory_space<vmem>>, %arg5: memref<4x1x32xf32, #tpu.memory_space<vmem>>, %arg6: memref<1x8x32xf32, #tpu.memory_space<vmem>>, %arg7: memref<8x32xf32, #tpu.memory_space<vmem>>) attributes {dimension_semantics = [#tpu.dimension_semantics<parallel>], iteration_bounds = array<i64: 2>, scalar_prefetch = 0 : i64, scratch_operands = 1 : i64, tpu.core_type = #tpu.core_type<tc>, window_params = [{transform_indices = @transform_0, window_bounds = array<i64: 1, 8, 32>}, {transform_indices = @transform_1, window_bounds = array<i64: 1, 8, 32>}, {transform_indices = @transform_2, window_bounds = array<i64: 1, 8, 32>}, {pipeline_mode = #tpu.pipeline_mode<synchronous>, transform_indices = @transform_3, window_bounds = array<i64: 4, 32, 32>}, {pipeline_mode = #tpu.pipeline_mode<synchronous>, transform_indices = @transform_4, window_bounds = array<i64: 4, 1, 32>}, {transform_indices = @transform_5, window_bounds = array<i64: 1, 8, 32>}]} {
    %c0 = arith.constant 0 : index
    %c0_0 = arith.constant 0 : index
    %c0_1 = arith.constant 0 : index
    %0 = vector.load %arg1[%c0, %c0_0, %c0_1] : memref<1x8x32xf32, #tpu.memory_space<vmem>>, vector<1x8x32xf32>
    %1 = vector.shape_cast %0 : vector<1x8x32xf32> to vector<8x32xf32>
    %2 = arith.truncf %1 : vector<8x32xf32> to vector<8x32xbf16>
    %c0_2 = arith.constant 0 : index
    %c0_3 = arith.constant 0 : index
    %c0_4 = arith.constant 0 : index
    %3 = vector.load %arg2[%c0_2, %c0_3, %c0_4] : memref<1x8x32xf32, #tpu.memory_space<vmem>>, vector<1x8x32xf32>
    %4 = vector.shape_cast %3 : vector<1x8x32xf32> to vector<8x32xf32>
    %5 = arith.truncf %4 : vector<8x32xf32> to vector<8x32xbf16>
    %c0_5 = arith.constant 0 : index
    %c0_6 = arith.constant 0 : index
    %c0_7 = arith.constant 0 : index
    %6 = vector.load %arg3[%c0_5, %c0_6, %c0_7] : memref<1x8x32xf32, #tpu.memory_space<vmem>>, vector<1x8x32xf32>
    %7 = vector.shape_cast %6 : vector<1x8x32xf32> to vector<8x32xf32>
    %8 = arith.truncf %7 : vector<8x32xf32> to vector<8x32xbf16>
    %c0_8 = arith.constant 0 : index
    %c0_9 = arith.constant 0 : index
    %c0_10 = arith.constant 0 : index
    %9 = vector.load %arg4[%c0_8, %c0_9, %c0_10] : memref<4x32x32xbf16, #tpu.memory_space<vmem>>, vector<1x32x32xbf16>
    %10 = vector.shape_cast %9 : vector<1x32x32xbf16> to vector<32x32xbf16>
    %cst = arith.constant dense<0.000000e+00> : vector<8x32xf32>
    %11 = tpu.matmul %2, %10, %cst {dimension_numbers = #tpu.dot_dimension_numbers<[1], [0], [0], [1], [0, 0, 1, 1], [], []>} : vector<8x32xbf16>, vector<32x32xbf16>, vector<8x32xf32> -> vector<8x32xf32>
    %c0_11 = arith.constant 0 : index
    %c0_12 = arith.constant 0 : index
    %c0_13 = arith.constant 0 : index
    %12 = vector.load %arg5[%c0_11, %c0_12, %c0_13] : memref<4x1x32xf32, #tpu.memory_space<vmem>>, vector<1x1x32xf32>
    %13 = vector.shape_cast %12 : vector<1x1x32xf32> to vector<1x32xf32>
    %14 = vector.broadcast %13 : vector<1x32xf32> to vector<8x32xf32>
    %15 = arith.addf %11, %14 : vector<8x32xf32>
    %c1 = arith.constant 1 : index
    %c0_14 = arith.constant 0 : index
    %c0_15 = arith.constant 0 : index
    %16 = vector.load %arg4[%c1, %c0_14, %c0_15] : memref<4x32x32xbf16, #tpu.memory_space<vmem>>, vector<1x32x32xbf16>
    %17 = vector.shape_cast %16 : vector<1x32x32xbf16> to vector<32x32xbf16>
    %cst_16 = arith.constant dense<0.000000e+00> : vector<8x32xf32>
    %18 = tpu.matmul %5, %17, %cst_16 {dimension_numbers = #tpu.dot_dimension_numbers<[1], [0], [0], [1], [0, 0, 1, 1], [], []>} : vector<8x32xbf16>, vector<32x32xbf16>, vector<8x32xf32> -> vector<8x32xf32>
    %c1_17 = arith.constant 1 : index
    %c0_18 = arith.constant 0 : index
    %c0_19 = arith.constant 0 : index
    %19 = vector.load %arg5[%c1_17, %c0_18, %c0_19] : memref<4x1x32xf32, #tpu.memory_space<vmem>>, vector<1x1x32xf32>
    %20 = vector.shape_cast %19 : vector<1x1x32xf32> to vector<1x32xf32>
    %21 = vector.broadcast %20 : vector<1x32xf32> to vector<8x32xf32>
    %22 = arith.addf %18, %21 : vector<8x32xf32>
    %c2 = arith.constant 2 : index
    %c0_20 = arith.constant 0 : index
    %c0_21 = arith.constant 0 : index
    %23 = vector.load %arg4[%c2, %c0_20, %c0_21] : memref<4x32x32xbf16, #tpu.memory_space<vmem>>, vector<1x32x32xbf16>
    %24 = vector.shape_cast %23 : vector<1x32x32xbf16> to vector<32x32xbf16>
    %cst_22 = arith.constant dense<0.000000e+00> : vector<8x32xf32>
    %25 = tpu.matmul %8, %24, %cst_22 {dimension_numbers = #tpu.dot_dimension_numbers<[1], [0], [0], [1], [0, 0, 1, 1], [], []>} : vector<8x32xbf16>, vector<32x32xbf16>, vector<8x32xf32> -> vector<8x32xf32>
    %c2_23 = arith.constant 2 : index
    %c0_24 = arith.constant 0 : index
    %c0_25 = arith.constant 0 : index
    %26 = vector.load %arg5[%c2_23, %c0_24, %c0_25] : memref<4x1x32xf32, #tpu.memory_space<vmem>>, vector<1x1x32xf32>
    %27 = vector.shape_cast %26 : vector<1x1x32xf32> to vector<1x32xf32>
    %28 = vector.broadcast %27 : vector<1x32xf32> to vector<8x32xf32>
    %29 = arith.addf %25, %28 : vector<8x32xf32>
    %30 = vector.extract_strided_slice %15 {offsets = [0, 0], sizes = [8, 8], strides = [1, 1]} : vector<8x32xf32> to vector<8x8xf32>
    %31 = arith.truncf %30 : vector<8x8xf32> to vector<8x8xbf16>
    %32 = vector.extract_strided_slice %22 {offsets = [0, 0], sizes = [8, 8], strides = [1, 1]} : vector<8x32xf32> to vector<8x8xf32>
    %33 = arith.truncf %32 : vector<8x8xf32> to vector<8x8xbf16>
    %34 = vector.extract_strided_slice %29 {offsets = [0, 0], sizes = [8, 8], strides = [1, 1]} : vector<8x32xf32> to vector<8x8xf32>
    %35 = arith.truncf %34 : vector<8x8xf32> to vector<8x8xbf16>
    %cst_26 = arith.constant dense<0.000000e+00> : vector<8x8xf32>
    %36 = tpu.matmul %31, %33, %cst_26 {dimension_numbers = #tpu.dot_dimension_numbers<[1], [1], [0], [0], [0, 0, 1, 0], [], []>} : vector<8x8xbf16>, vector<8x8xbf16>, vector<8x8xf32> -> vector<8x8xf32>
    %cst_27 = arith.constant dense<0xFF800000> : vector<8xf32>
    %37 = vector.multi_reduction <maximumf>, %36, %cst_27 [1] : vector<8x8xf32> to vector<8xf32>
    %38 = vector.shape_cast %37 : vector<8xf32> to vector<8x1xf32>
    %39 = vector.broadcast %38 : vector<8x1xf32> to vector<8x8xf32>
    %40 = arith.subf %36, %39 : vector<8x8xf32>
    %41 = math.exp %40 : vector<8x8xf32>
    %cst_28 = arith.constant dense<0.000000e+00> : vector<8xf32>
    %42 = vector.multi_reduction <add>, %41, %cst_28 [1] : vector<8x8xf32> to vector<8xf32>
    %43 = vector.shape_cast %42 : vector<8xf32> to vector<8x1xf32>
    %44 = tpu.reciprocal %43 {approx = true} : vector<8x1xf32> -> vector<8x1xf32>
    %45 = vector.broadcast %44 : vector<8x1xf32> to vector<8x8xf32>
    %46 = arith.mulf %41, %45 : vector<8x8xf32>
    %47 = arith.truncf %46 : vector<8x8xf32> to vector<8x8xbf16>
    %cst_29 = arith.constant dense<0.000000e+00> : vector<8x8xf32>
    %48 = tpu.matmul %47, %35, %cst_29 {dimension_numbers = #tpu.dot_dimension_numbers<[1], [0], [0], [1], [0, 0, 1, 1], [], []>} : vector<8x8xbf16>, vector<8x8xbf16>, vector<8x8xf32> -> vector<8x8xf32>
    %c0_30 = arith.constant 0 : index
    %c0_31 = arith.constant 0 : index
    %49 = vector.load %arg7[%c0_30, %c0_31] : memref<8x32xf32, #tpu.memory_space<vmem>>, vector<8x8xf32>
    tpu.vector_store %arg7[%c0_30, %c0_31], %48 {strides = array<i32>} : memref<8x32xf32, #tpu.memory_space<vmem>>, vector<8x8xf32>,
    %50 = vector.extract_strided_slice %15 {offsets = [0, 8], sizes = [8, 8], strides = [1, 1]} : vector<8x32xf32> to vector<8x8xf32>
    %51 = arith.truncf %50 : vector<8x8xf32> to vector<8x8xbf16>
    %52 = vector.extract_strided_slice %22 {offsets = [0, 8], sizes = [8, 8], strides = [1, 1]} : vector<8x32xf32> to vector<8x8xf32>
    %53 = arith.truncf %52 : vector<8x8xf32> to vector<8x8xbf16>
    %54 = vector.extract_strided_slice %29 {offsets = [0, 8], sizes = [8, 8], strides = [1, 1]} : vector<8x32xf32> to vector<8x8xf32>
    %55 = arith.truncf %54 : vector<8x8xf32> to vector<8x8xbf16>
    %cst_32 = arith.constant dense<0.000000e+00> : vector<8x8xf32>
    %56 = tpu.matmul %51, %53, %cst_32 {dimension_numbers = #tpu.dot_dimension_numbers<[1], [1], [0], [0], [0, 0, 1, 0], [], []>} : vector<8x8xbf16>, vector<8x8xbf16>, vector<8x8xf32> -> vector<8x8xf32>
    %cst_33 = arith.constant dense<0xFF800000> : vector<8xf32>
    %57 = vector.multi_reduction <maximumf>, %56, %cst_33 [1] : vector<8x8xf32> to vector<8xf32>
    %58 = vector.shape_cast %57 : vector<8xf32> to vector<8x1xf32>
    %59 = vector.broadcast %58 : vector<8x1xf32> to vector<8x8xf32>
    %60 = arith.subf %56, %59 : vector<8x8xf32>
    %61 = math.exp %60 : vector<8x8xf32>
    %cst_34 = arith.constant dense<0.000000e+00> : vector<8xf32>
    %62 = vector.multi_reduction <add>, %61, %cst_34 [1] : vector<8x8xf32> to vector<8xf32>
    %63 = vector.shape_cast %62 : vector<8xf32> to vector<8x1xf32>
    %64 = tpu.reciprocal %63 {approx = true} : vector<8x1xf32> -> vector<8x1xf32>
    %65 = vector.broadcast %64 : vector<8x1xf32> to vector<8x8xf32>
    %66 = arith.mulf %61, %65 : vector<8x8xf32>
    %67 = arith.truncf %66 : vector<8x8xf32> to vector<8x8xbf16>
    %cst_35 = arith.constant dense<0.000000e+00> : vector<8x8xf32>
    %68 = tpu.matmul %67, %55, %cst_35 {dimension_numbers = #tpu.dot_dimension_numbers<[1], [0], [0], [1], [0, 0, 1, 1], [], []>} : vector<8x8xbf16>, vector<8x8xbf16>, vector<8x8xf32> -> vector<8x8xf32>
    %c0_36 = arith.constant 0 : index
    %c8 = arith.constant 8 : index
    %69 = vector.load %arg7[%c0_36, %c8] : memref<8x32xf32, #tpu.memory_space<vmem>>, vector<8x8xf32>
    tpu.vector_store %arg7[%c0_36, %c8], %68 {strides = array<i32>} : memref<8x32xf32, #tpu.memory_space<vmem>>, vector<8x8xf32>,
    %70 = vector.extract_strided_slice %15 {offsets = [0, 16], sizes = [8, 8], strides = [1, 1]} : vector<8x32xf32> to vector<8x8xf32>
    %71 = arith.truncf %70 : vector<8x8xf32> to vector<8x8xbf16>
    %72 = vector.extract_strided_slice %22 {offsets = [0, 16], sizes = [8, 8], strides = [1, 1]} : vector<8x32xf32> to vector<8x8xf32>
    %73 = arith.truncf %72 : vector<8x8xf32> to vector<8x8xbf16>
    %74 = vector.extract_strided_slice %29 {offsets = [0, 16], sizes = [8, 8], strides = [1, 1]} : vector<8x32xf32> to vector<8x8xf32>
    %75 = arith.truncf %74 : vector<8x8xf32> to vector<8x8xbf16>
    %cst_37 = arith.constant dense<0.000000e+00> : vector<8x8xf32>
    %76 = tpu.matmul %71, %73, %cst_37 {dimension_numbers = #tpu.dot_dimension_numbers<[1], [1], [0], [0], [0, 0, 1, 0], [], []>} : vector<8x8xbf16>, vector<8x8xbf16>, vector<8x8xf32> -> vector<8x8xf32>
    %cst_38 = arith.constant dense<0xFF800000> : vector<8xf32>
    %77 = vector.multi_reduction <maximumf>, %76, %cst_38 [1] : vector<8x8xf32> to vector<8xf32>
    %78 = vector.shape_cast %77 : vector<8xf32> to vector<8x1xf32>
    %79 = vector.broadcast %78 : vector<8x1xf32> to vector<8x8xf32>
    %80 = arith.subf %76, %79 : vector<8x8xf32>
    %81 = math.exp %80 : vector<8x8xf32>
    %cst_39 = arith.constant dense<0.000000e+00> : vector<8xf32>
    %82 = vector.multi_reduction <add>, %81, %cst_39 [1] : vector<8x8xf32> to vector<8xf32>
    %83 = vector.shape_cast %82 : vector<8xf32> to vector<8x1xf32>
    %84 = tpu.reciprocal %83 {approx = true} : vector<8x1xf32> -> vector<8x1xf32>
    %85 = vector.broadcast %84 : vector<8x1xf32> to vector<8x8xf32>
    %86 = arith.mulf %81, %85 : vector<8x8xf32>
    %87 = arith.truncf %86 : vector<8x8xf32> to vector<8x8xbf16>
    %cst_40 = arith.constant dense<0.000000e+00> : vector<8x8xf32>
    %88 = tpu.matmul %87, %75, %cst_40 {dimension_numbers = #tpu.dot_dimension_numbers<[1], [0], [0], [1], [0, 0, 1, 1], [], []>} : vector<8x8xbf16>, vector<8x8xbf16>, vector<8x8xf32> -> vector<8x8xf32>
    %c0_41 = arith.constant 0 : index
    %c16 = arith.constant 16 : index
    %89 = vector.load %arg7[%c0_41, %c16] : memref<8x32xf32, #tpu.memory_space<vmem>>, vector<8x8xf32>
    tpu.vector_store %arg7[%c0_41, %c16], %88 {strides = array<i32>} : memref<8x32xf32, #tpu.memory_space<vmem>>, vector<8x8xf32>,
    %90 = vector.extract_strided_slice %15 {offsets = [0, 24], sizes = [8, 8], strides = [1, 1]} : vector<8x32xf32> to vector<8x8xf32>
    %91 = arith.truncf %90 : vector<8x8xf32> to vector<8x8xbf16>
    %92 = vector.extract_strided_slice %22 {offsets = [0, 24], sizes = [8, 8], strides = [1, 1]} : vector<8x32xf32> to vector<8x8xf32>
    %93 = arith.truncf %92 : vector<8x8xf32> to vector<8x8xbf16>
    %94 = vector.extract_strided_slice %29 {offsets = [0, 24], sizes = [8, 8], strides = [1, 1]} : vector<8x32xf32> to vector<8x8xf32>
    %95 = arith.truncf %94 : vector<8x8xf32> to vector<8x8xbf16>
    %cst_42 = arith.constant dense<0.000000e+00> : vector<8x8xf32>
    %96 = tpu.matmul %91, %93, %cst_42 {dimension_numbers = #tpu.dot_dimension_numbers<[1], [1], [0], [0], [0, 0, 1, 0], [], []>} : vector<8x8xbf16>, vector<8x8xbf16>, vector<8x8xf32> -> vector<8x8xf32>
    %cst_43 = arith.constant dense<0xFF800000> : vector<8xf32>
    %97 = vector.multi_reduction <maximumf>, %96, %cst_43 [1] : vector<8x8xf32> to vector<8xf32>
    %98 = vector.shape_cast %97 : vector<8xf32> to vector<8x1xf32>
    %99 = vector.broadcast %98 : vector<8x1xf32> to vector<8x8xf32>
    %100 = arith.subf %96, %99 : vector<8x8xf32>
    %101 = math.exp %100 : vector<8x8xf32>
    %cst_44 = arith.constant dense<0.000000e+00> : vector<8xf32>
    %102 = vector.multi_reduction <add>, %101, %cst_44 [1] : vector<8x8xf32> to vector<8xf32>
    %103 = vector.shape_cast %102 : vector<8xf32> to vector<8x1xf32>
    %104 = tpu.reciprocal %103 {approx = true} : vector<8x1xf32> -> vector<8x1xf32>
    %105 = vector.broadcast %104 : vector<8x1xf32> to vector<8x8xf32>
    %106 = arith.mulf %101, %105 : vector<8x8xf32>
    %107 = arith.truncf %106 : vector<8x8xf32> to vector<8x8xbf16>
    %cst_45 = arith.constant dense<0.000000e+00> : vector<8x8xf32>
    %108 = tpu.matmul %107, %95, %cst_45 {dimension_numbers = #tpu.dot_dimension_numbers<[1], [0], [0], [1], [0, 0, 1, 1], [], []>} : vector<8x8xbf16>, vector<8x8xbf16>, vector<8x8xf32> -> vector<8x8xf32>
    %c0_46 = arith.constant 0 : index
    %c24 = arith.constant 24 : index
    %109 = vector.load %arg7[%c0_46, %c24] : memref<8x32xf32, #tpu.memory_space<vmem>>, vector<8x8xf32>
    tpu.vector_store %arg7[%c0_46, %c24], %108 {strides = array<i32>} : memref<8x32xf32, #tpu.memory_space<vmem>>, vector<8x8xf32>,
    %c0_47 = arith.constant 0 : index
    %c0_48 = arith.constant 0 : index
    %110 = vector.load %arg7[%c0_47, %c0_48] : memref<8x32xf32, #tpu.memory_space<vmem>>, vector<8x32xf32>
    %111 = arith.truncf %110 : vector<8x32xf32> to vector<8x32xbf16>
    %c3 = arith.constant 3 : index
    %c0_49 = arith.constant 0 : index
    %c0_50 = arith.constant 0 : index
    %112 = vector.load %arg4[%c3, %c0_49, %c0_50] : memref<4x32x32xbf16, #tpu.memory_space<vmem>>, vector<1x32x32xbf16>
    %113 = vector.shape_cast %112 : vector<1x32x32xbf16> to vector<32x32xbf16>
    %cst_51 = arith.constant dense<0.000000e+00> : vector<8x32xf32>
    %114 = tpu.matmul %111, %113, %cst_51 {dimension_numbers = #tpu.dot_dimension_numbers<[1], [0], [0], [1], [0, 0, 1, 1], [], []>} : vector<8x32xbf16>, vector<32x32xbf16>, vector<8x32xf32> -> vector<8x32xf32>
    %c3_52 = arith.constant 3 : index
    %c0_53 = arith.constant 0 : index
    %c0_54 = arith.constant 0 : index
    %115 = vector.load %arg5[%c3_52, %c0_53, %c0_54] : memref<4x1x32xf32, #tpu.memory_space<vmem>>, vector<1x1x32xf32>
    %116 = vector.shape_cast %115 : vector<1x1x32xf32> to vector<1x32xf32>
    %117 = vector.broadcast %116 : vector<1x32xf32> to vector<8x32xf32>
    %118 = arith.addf %114, %117 : vector<8x32xf32>
    %c0_55 = arith.constant 0 : index
    %c0_56 = arith.constant 0 : index
    %c0_57 = arith.constant 0 : index
    %119 = vector.load %arg6[%c0_55, %c0_56, %c0_57] : memref<1x8x32xf32, #tpu.memory_space<vmem>>, vector<1x8x32xf32>
    %120 = vector.shape_cast %119 : vector<1x8x32xf32> to vector<8x32xf32>
    %121 = vector.shape_cast %118 : vector<8x32xf32> to vector<1x8x32xf32>
    tpu.vector_store %arg6[%c0_55, %c0_56, %c0_57], %121 {strides = array<i32>} : memref<1x8x32xf32, #tpu.memory_space<vmem>>, vector<1x8x32xf32>,
    return
  }
  func.func @transform_0(%arg0: i32) -> (i32, i32, i32) {
    %c0_i32 = arith.constant 0 : i32
    %c0_i32_0 = arith.constant 0 : i32
    %c0_i32_1 = arith.constant 0 : i32
    return %arg0, %c0_i32, %c0_i32_0 : i32, i32, i32
  }
  func.func @transform_1(%arg0: i32) -> (i32, i32, i32) {
    %c0_i32 = arith.constant 0 : i32
    %c0_i32_0 = arith.constant 0 : i32
    %c0_i32_1 = arith.constant 0 : i32
    return %arg0, %c0_i32, %c0_i32_0 : i32, i32, i32
  }
  func.func @transform_2(%arg0: i32) -> (i32, i32, i32) {
    %c0_i32 = arith.constant 0 : i32
    %c0_i32_0 = arith.constant 0 : i32
    %c0_i32_1 = arith.constant 0 : i32
    return %arg0, %c0_i32, %c0_i32_0 : i32, i32, i32
  }
  func.func @transform_3(%arg0: i32) -> (i32, i32, i32) {
    %c0_i32 = arith.constant 0 : i32
    %c0_i32_0 = arith.constant 0 : i32
    %c0_i32_1 = arith.constant 0 : i32
    %c0_i32_2 = arith.constant 0 : i32
    return %c0_i32, %c0_i32_0, %c0_i32_1 : i32, i32, i32
  }
  func.func @transform_4(%arg0: i32) -> (i32, i32, i32) {
    %c0_i32 = arith.constant 0 : i32
    %c0_i32_0 = arith.constant 0 : i32
    %c0_i32_1 = arith.constant 0 : i32
    %c0_i32_2 = arith.constant 0 : i32
    return %c0_i32, %c0_i32_0, %c0_i32_1 : i32, i32, i32
  }
  func.func @transform_5(%arg0: i32) -> (i32, i32, i32) {
    %c0_i32 = arith.constant 0 : i32
    %c0_i32_0 = arith.constant 0 : i32
    %c0_i32_1 = arith.constant 0 : i32
    return %arg0, %c0_i32, %c0_i32_0 : i32, i32, i32
  }
}

</mosaic_0001>

<bundles_post_ra>
// kernel: tpu_custom_call.1
= control target key start
LH: loop header
LB: loop body
LE: loop exit
PB: predicated region body
PF: predicated region fallthrough
CT: control target
= control target key end

     0   :  { %s2075_s0 = inlined_call_operand.hbm [shape: f32[2,8,32], index: 0, kind: input, shape index: {}]   ;;  %s2076_s1 = inlined_call_operand.hbm [shape: f32[2,8,32], index: 1, kind: input, shape index: {}]   ;;  %s2077_s2 = inlined_call_operand.hbm [shape: f32[2,8,32], index: 2, kind: input, shape index: {}]   ;;  %s2078_s3 = inlined_call_operand.hbm [shape: bf16[4,32,32], index: 3, kind: input, shape index: {}]   ;;  %s2079_s4 = inlined_call_operand.vmem [shape: f32[4,1,32], index: 4, kind: input, shape index: {}]   ;;  %s2080_s5 = inlined_call_operand.hbm [shape: f32[2,8,32], index: 5, kind: output, shape index: {}]  }
   0x1   :  { %2097 = sst [smem:[#allocation21_spill]] %s2076_s1 }
   0x2   :  { %2098 = sst [smem:[#allocation22_spill]] %s2080_s5 }
   0x3   :  { %10 = vsyncpa [#allocation4], 0 }
   0x4   :  { %12 = vsyncpa [#allocation4 + $0x1], 0 }
   0x5   :  { %13 = vsyncpa [#allocation7], 0 }
   0x6   :  { %15 = vsyncpa [#allocation7 + $0x1], 0 }
   0x7   :  { %16 = vsyncpa [#allocation10], 0 }
   0x8   :  { %17 = vsyncpa [#allocation5], 0 }
   0x9   :  { %19 = vsyncpa [#allocation5 + $0x1], 0  ;;  %s1700_s18 = smov 0   ;;  %s1702_s19 = smov 0  }
   0xa   :  { %s1704_s20 = smov 0   ;;  %s1706_s21 = smov 0  }
   0xb LB: > { %2099 = sst [smem:[#allocation16_spill]] %s1641_s18  ;;  %s1721_s22 = sadd.s32 1, %s1653_s21   ;;  %s1653_s21 = sphi %s1706_s21, %s2128_s21   ;;  %s1649_s20 = sphi %s1704_s20, %s2132_s20   ;;  %s1645_s19 = sphi %s1702_s19, %s2131_s19   ;;  %s1641_s18 = sphi %s1700_s18, %s2130_s18  }
   0xc   : > { %2100 = sst [smem:[#allocation17_spill]] %s1653_s21  ;;  %s32_s23 = sadd.s32 1, %s1649_s20 }
   0xd   : > { %2101 = sst [smem:[#allocation18_spill]] %s1721_s22  ;;  %s29_s24 = ssub.s32 %s1653_s21, %s1721_s22 }
   0xe   : > { %p2081_p0 = scmp.ne.s32.totalorder %s1649_s20, %s1645_s19  ;;  %p30_p1 = scmp.eq.s32.totalorder %s29_s24, 0 }
   0xf   : > { %p40_p2 = scmp.eq.s32.totalorder %s1653_s21, 0  ;;  %p1391_p4 = scmp.lt.s32.totalorder %s1653_s21, 2 }
  0x10   : > { %s1732_s25 = scalar_select %p30_p1, %s1649_s20, %s32_s23  }
  0x11   : > { %p41_p5 = por %p40_p2, %p2081_p0  ;;  %s2082_s26 = sand.u32 1, %s1649_s20  }
  0x12   : > { %2102 = sst [smem:[#allocation19_spill]] %s1732_s25  ;;  %s1740_s27 = sshll.u32 %s2082_s26, 3 }
  0x13   : > { %s1743_s28 = sshll.u32 %s1653_s21, 7  ;;  %p1745_p6 = pnand %p1391_p4, %p41_p5 }
  0x14   : > { %s223_s30 = sand.u32 1, %s1653_s21   ;;  %s2104_s1 = sld [smem:[#allocation21_spill]] }
  0x15   : > { %s2103_s29 = scalar_select %p1745_p6, 1, 0 }
  0x16   : > { %s227_s9 = scalar_lea.vmem [#allocation6], %s1740_s27  ;;  %s1759_s11 = scalar_lea.sflag [#allocation7], %s223_s30 }
  0x17   : > { %s234_s10 = sshll.u32 %s227_s9, 4  ;;  %p1765_p8 = pneg %p1745_p6  ;;  %s1757_s10 = int_to_ptr.vmem [resolvable:$true] %s234_s10 }
  0x19   : > { %s2105_s13 = scalar_select %p1765_p8, 1, 0 }
  0x1a   : > { %s1754_s8 = scalar_lea.hbm %s2104_s1, %s1743_s28  ;;  %s1466_s16 = scalar_lea.hbm %s2104_s1, 256 }
  0x1b   : > { %s1461_s12 = scalar_lea.hbm %s1754_s8, 128  ;;  %p1467_p11 = scmp.lt.u32.totalorder %s1754_s8, %s2104_s1 }
  0x1c   : > { %p1462_p7 = scmp.ne.s32.totalorder %s1754_s8, %s1461_s12  ;;  %p1468_p12 = scmp.lt.u32.totalorder %s1466_s16, %s1461_s12 }
  0x1d   : > { %p1470_p1 = scmp.lt.u32.totalorder %s1461_s12, %s1754_s8 }
  0x1e   : > { %p1464_p9 = pnand %p1765_p8, %p1462_p7  ;;  %p1469_p13 = por %p1468_p12, %p1467_p11 }
  0x20   : > { %p1465_p10 = pneg %p1464_p9  ;;  %p1471_p2 = por %p1470_p1, %p1469_p13 }
  0x22   : > { %p1472_p4 = pnand %p1471_p2, %p1465_p10 }
  0x24   : > { %1475 = shalt.err (!%p1472_p4)
}
  0x25   : > { %s1476_s24 = scalar_lea.vmem %s1757_s10, 128  ;;  %s1655_s30 = smov [#allocation6]  }
  0x26   : > { %p1477_p5 = scmp.ne.s32.totalorder %s1757_s10, %s1476_s24  ;;  %s1481_s6 = sshll.u32 %s1655_s30, 4  ;;  %s1482_s6 = int_to_ptr.vmem [resolvable:$false] %s1481_s6 }
  0x27   : > { %s1483_s7 = scalar_lea.vmem %s1482_s6, 256  ;;  %p1484_p3 = scmp.lt.s32.totalorder %s1757_s10, %s1482_s6 }
  0x28   : > { %p1479_p7 = pnand %p1477_p5, %p1765_p8  ;;  %p1485_p0 = scmp.lt.s32.totalorder %s1483_s7, %s1476_s24 }
  0x2a   : > { %p1480_p9 = pneg %p1479_p7  ;;  %p1486_p11 = por %p1485_p0, %p1484_p3 }
  0x2c   : > { %p1487_p12 = pnand %p1486_p11, %p1480_p9 }
  0x2e   : > { %1490 = shalt.err (!%p1487_p12)
}
  0x2f   : > { %1382 = dma.hbm_to_vmem [thread:$0]  (!%p1745_p6), %s1754_s8, 128, %s1757_s10, %s1759_s11  }
  0x30   : > { %s1790_s9 = sadd.s32 4294967295, %s1653_s21   ;;  %s1205_s12 = sadd.s32 4294967294, %s1653_s21  }
  0x31   : > { %p45_p0 = scmp.ne.s32.totalorder %s1645_s19, %s1641_s18  ;;  %p2087_p3 = scmp.eq.s32.totalorder %s1790_s9, 0 }
  0x32   : > { %p163_p10 = scmp.eq.s32.totalorder %s1790_s9, 1  ;;  %p169_p13 = scmp.eq.s32.totalorder %s1205_s12, 1 }
  0x33   : > { %p1799_p1 = por %p2087_p3, %p45_p0  ;;  %p1206_p2 = scmp.ge.s32.totalorder %s1653_s21, 1 }
  0x34   : > { %p2107_p4 = scmp.ne.s32.totalorder %s1649_s20, %s1645_s19  ;;  %p1811_p7 = por %p169_p13, %p45_p0 }
  0x35   : > { %s2106_s14 = scalar_select %p1799_p1, 1, 0 }
  0x36   : > { %p1807_p5 = por %p163_p10, %p2107_p4  ;;  %p176_p9 = scmp.lt.s32.totalorder %s1653_s21, 3 }
  0x37   : > { %s2109_s10 = scalar_select %p1811_p7, 1, 0 }
  0x38   : > { %s2108_s8 = scalar_select %p1807_p5, 1, 0 }
  0x39   : > { %2110 = sst [smem:[#allocation20_spill]] %s2109_s10  ;;  %p1816_p11 = pnand %p1206_p2, %p176_p9 }
  0x3a   : > { %s1656_s16 = smov [#allocation9]   ;;  %s1828_s30 = scalar_lea.hbm %s2075_s0, %s1743_s28 }
  0x3b   : > { %s2111_s15 = scalar_select %p1816_p11, 1, 0 }
  0x3c   : > { %s188_s17 = sshll.u32 %s1656_s16, 4  ;;  %p1372_p12 = pneg %p1816_p11  ;;  %s1820_s17 = int_to_ptr.vmem [resolvable:$true] %s188_s17 }
  0x3d   : > { %s209_s7 = scalar_lea.vmem [#allocation3], %s1740_s27  ;;  %s1843_s1 = scalar_lea.hbm %s2077_s2, %s1743_s28 }
  0x3e   : > { %p1832_p0 = pnand %p1372_p12, %p2087_p3  ;;  %s216_s12 = sshll.u32 %s209_s7, 4  ;;  %s1837_s12 = int_to_ptr.vmem [resolvable:$true] %s216_s12 }
  0x3f   : > { %s1491_s23 = scalar_lea.hbm %s2078_s3, 1024 }
  0x40   : > { %p1492_p10 = scmp.ne.s32.totalorder %s2078_s3, %s1491_s23  ;;  %p1493_p13 = pneg %p1832_p0 }
  0x41   : > { %p1498_p9 = scmp.lt.u32.totalorder %s1491_s23, %s2078_s3 }
  0x42   : > { %p1494_p2 = pnand %p1493_p13, %p1492_p10 }
  0x44   : > { %p1495_p4 = pneg %p1494_p2 }
  0x46   : > { %p1500_p12 = pnand %p1498_p9, %p1495_p4 }
  0x48   : > { %1503 = shalt.err (!%p1500_p12)
}
  0x49   : > { %s1504_s26 = scalar_lea.vmem %s1820_s17, 1024  ;;  %p1512_p1 = scmp.lt.s32.totalorder %s1820_s17, %s1820_s17 }
  0x4a   : > { %p1505_p3 = scmp.ne.s32.totalorder %s1820_s17, %s1504_s26  ;;  %p1513_p11 = scmp.lt.s32.totalorder %s1504_s26, %s1504_s26 }
  0x4c   : > { %p1507_p7 = pnand %p1505_p3, %p1493_p13  ;;  %p1514_p6 = por %p1513_p11, %p1512_p1 }
  0x4e   : > { %p1508_p5 = pneg %p1507_p7 }
  0x50   : > { %p1515_p8 = pnand %p1514_p6, %p1508_p5 }
  0x52   : > { %1518 = shalt.err (!%p1515_p8)
}
  0x53   : > { %s1657_s21 = smov 64   ;;  %s1658_s22 = smov 4  }
  0x54   : > { %1375 = dma.hbm_to_vmem [thread:$0]  (!%p1832_p0), %s2078_s3, 1024, %s1820_s17, [#allocation10], %s1657_s21, %s1657_s21, %s1658_s22  }
  0x55   : > { %s2113_s10 = sand.u32 1, %s1649_s20   ;;  %s1519_s23 = scalar_lea.hbm %s1828_s30, 128 }
  0x56   : > { %s206_s16 = scalar_lea.sflag [#allocation4], %s2113_s10  ;;  %p1520_p6 = scmp.ne.s32.totalorder %s1828_s30, %s1519_s23 }
  0x57   : > { %p2114_p8 = scmp.ne.s32.totalorder %s2105_s13, 0  ;;  %s1524_s26 = scalar_lea.hbm %s2075_s0, 256 }
  0x58   : > { %p1525_p5 = scmp.lt.u32.totalorder %s1828_s30, %s2075_s0  ;;  %p1526_p7 = scmp.lt.u32.totalorder %s1524_s26, %s1519_s23 }
  0x59   : > { %p1522_p3 = pnand %p1520_p6, %p2114_p8  ;;  %p1528_p10 = scmp.lt.u32.totalorder %s1519_s23, %s1828_s30 }
  0x5a   : > { %p1527_p11 = por %p1526_p7, %p1525_p5 }
  0x5b   : > { %p1523_p1 = pneg %p1522_p3 }
  0x5c   : > { %p1529_p13 = por %p1528_p10, %p1527_p11 }
  0x5e   : > { %p1530_p0 = pnand %p1529_p13, %p1523_p1 }
  0x60   : > { %1533 = shalt.err (!%p1530_p0)
}
  0x61   : > { %s1534_s17 = scalar_lea.vmem %s1837_s12, 128  ;;  %s1659_s6 = smov [#allocation3]  }
  0x62   : > { %p1535_p2 = scmp.ne.s32.totalorder %s1837_s12, %s1534_s17  ;;  %s1539_s21 = sshll.u32 %s1659_s6, 4  ;;  %s1540_s21 = int_to_ptr.vmem [resolvable:$false] %s1539_s21 }
  0x63   : > { %s1541_s5 = scalar_lea.vmem %s1540_s21, 256  ;;  %p1542_p12 = scmp.lt.s32.totalorder %s1837_s12, %s1540_s21 }
  0x64   : > { %p1537_p4 = pnand %p1535_p2, %p2114_p8  ;;  %p1543_p6 = scmp.lt.s32.totalorder %s1541_s5, %s1534_s17 }
  0x66   : > { %p1538_p9 = pneg %p1537_p4  ;;  %p1544_p3 = por %p1543_p6, %p1542_p12 }
  0x68   : > { %p1545_p5 = pnand %p1544_p3, %p1538_p9 }
  0x6a   : > { %1548 = shalt.err (!%p1545_p5)
}
  0x6b   : > { %p2115_p1 = scmp.ne.s32.totalorder %s2103_s29, 0  ;;  %s245_s18 = scalar_lea.vmem [#allocation8], %s1740_s27 }
  0x6c   : > { %s252_s22 = sshll.u32 %s245_s18, 4  ;;  %s1549_s25 = scalar_lea.hbm %s1843_s1, 128  ;;  %s253_s22 = int_to_ptr.vmem [resolvable:$true] %s252_s22 }
  0x6d   : > { %1379 = dma.hbm_to_vmem [thread:$0]  (!%p2115_p1), %s1828_s30, 128, %s1837_s12, %s206_s16  }
  0x6e   : > { %p1550_p7 = scmp.ne.s32.totalorder %s1843_s1, %s1549_s25  ;;  %s1554_s23 = scalar_lea.hbm %s2077_s2, 256 }
  0x6f   : > { %p1555_p13 = scmp.lt.u32.totalorder %s1843_s1, %s2077_s2  ;;  %p1556_p0 = scmp.lt.u32.totalorder %s1554_s23, %s1549_s25 }
  0x70   : > { %p1552_p11 = pnand %p1550_p7, %p2114_p8  ;;  %p1558_p4 = scmp.lt.u32.totalorder %s1549_s25, %s1843_s1 }
  0x71   : > { %p1557_p2 = por %p1556_p0, %p1555_p13 }
  0x72   : > { %p1553_p10 = pneg %p1552_p11 }
  0x73   : > { %p1559_p9 = por %p1558_p4, %p1557_p2 }
  0x75   : > { %p1560_p12 = pnand %p1559_p9, %p1553_p10 }
  0x77   : > { %1563 = shalt.err (!%p1560_p12)
}
  0x78   : > { %s1564_s27 = scalar_lea.vmem %s253_s22, 128  ;;  %s1660_s30 = smov [#allocation8]  }
  0x79   : > { %p1565_p6 = scmp.ne.s32.totalorder %s253_s22, %s1564_s27  ;;  %s1569_s12 = sshll.u32 %s1660_s30, 4  ;;  %s1570_s12 = int_to_ptr.vmem [resolvable:$false] %s1569_s12 }
  0x7a   : > { %s1571_s16 = scalar_lea.vmem %s1570_s12, 256  ;;  %p1572_p7 = scmp.lt.s32.totalorder %s253_s22, %s1570_s12 }
  0x7b   : > { %p1567_p3 = pnand %p1565_p6, %p2114_p8  ;;  %p1573_p11 = scmp.lt.s32.totalorder %s1571_s16, %s1564_s27 }
  0x7d   : > { %p1568_p5 = pneg %p1567_p3  ;;  %p1574_p1 = por %p1573_p11, %p1572_p7 }
  0x7f   : > { %p1575_p0 = pnand %p1574_p1, %p1568_p5 }
  0x81   : > { %1578 = shalt.err (!%p1575_p0)
}
  0x82   : > { %p2116_p13 = scmp.ne.s32.totalorder %s2103_s29, 0  ;;  %p2117_p10 = scmp.ne.s32.totalorder %s2111_s15, 0 }
  0x83   : > { %s1911_s13 = sand.u32 (!%p2117_p10), 1, %s1645_s19   ;;  %p2118_p8 = scmp.ne.s32.totalorder (!%p2117_p10), %s2106_s14, 0 }
  0x84   : > { %1385 = dma.hbm_to_vmem [thread:$0]  (!%p2116_p13), %s1843_s1, 128, %s253_s22, %s1759_s11  }
  0x85   : > { %261 = sbr.rel (%p2117_p10) target bundleno = 1606 (0x646), region = 40  ;;  %s1914_s26 = sshll.u32 (!%p2117_p10), %s1911_s13, 3 }
  0x86   : > { %s264_s17 = scalar_lea.sflag (!%p2117_p10), [#allocation4], %s1911_s13  ;;  %s267_s6 = scalar_lea.vmem (!%p2117_p10), [#allocation3], %s1914_s26 }
  0x8c   : > { %1624 = dma.done.wait (%p2118_p8), %s264_s17, 128  }
  0x8d   : > { %1626 = vsyncadd (%p2118_p8), %s264_s17, 4294967168  ;;  %s272_s1 = sand.u32 1, %s1790_s9   ;;  %s276_s11 = scalar_lea.vmem [#allocation6], %s1914_s26 }
  0x8e   : > { %s273_s29 = scalar_lea.sflag [#allocation7], %s272_s1 }
  0x8f   : > { %1628 = dma.done.wait (%p2118_p8), %s273_s29, 256  }
  0x90   : > { %1630 = vsyncadd (%p2118_p8), %s273_s29, 4294967040  ;;  %s285_s15 = scalar_lea.vmem [#allocation8], %s1914_s26  ;;  %p2119_p1 = scmp.eq.s32.totalorder %s1790_s9, 0 }
  0x92   : > { %1632 = dma.done.wait (%p2119_p1), [#allocation10], 1024   ;;  %p2120_p2 = pmov %p2119_p1 }
  0x93   : > { %v1661_v0 = vmov 0.0   ;;  %vm1662_vm0 = vmmov 0   ;;  %v1437_v1 = vld [vmem:[#allocation9 + $0x10] sm:$0xff]   ;;  %v1438_v2 = vld [vmem:[#allocation9] sm:$0xff]   ;;  %v1439_v3 = vld [vmem:[#allocation9 + $0x18] sm:$0xff]   ;;  %vm356_vm1 = vcmask 261120  }
  0x94   : > { %1634 = vsyncadd (%p2120_p2), [#allocation10], 4294966272  ;;  %1288 = vmatprep.subr.bf16.mxu1 %v1661_v0  ;;  %1280 = vmatprep.subr.bf16.mxu0 %v1661_v0  ;;  %v329_v4 = vld [vmem:[%s276_s11] sm:$0xff]  ;;  %v327_v6 = vld [vmem:[%s267_s6] sm:$0xff]  ;;  %vm539_vm2 = vcmask 64512   ;;  %s1663_s22 = smov 112  }
  0x95   : > { %1292 = vmatprep.mubr.msk.bf16.mxu1 %vm1662_vm0, %v1661_v0  ;;  %1284 = vmatprep.mubr.msk.bf16.mxu0 %vm1662_vm0, %v1661_v0  ;;  %v1440_v5 = vld [vmem:[#allocation9 + $0x8] sm:$0xff]   ;;  %v330_v7 = vpack.c.bf16 %v329_v4, %v329_v4  ;;  %v328_v8 = vpack.c.bf16 %v327_v6, %v327_v6  ;;  %s1664_s25 = smov 120   ;;  %s1665_s28 = smov 104   ;;  %v1441_v24 = vld [vmem:[#allocation9 + $0x20] sm:$0xff]   ;;  %v331_v26 = vld [vmem:[%s285_s15] sm:$0xff]  ;;  %vm601_vm3 = vcmask 1043456  }
  0x96   : > { %1289 = vmatpush3.bf16.msra.mxu1 %v1437_v1  ;;  %1281 = vmatpush3.bf16.msra.mxu0 %v1438_v2  ;;  %v1226_v9 = vld [vmem:[%s2079_s4 + $0x1] ss:$0 sm:$0xff]  ;;  %v1221_v10 = vld [vmem:[%s2079_s4] ss:$0 sm:$0xff]  ;;  %v332_v27 = vpack.c.bf16 %v331_v26, %v331_v26  ;;  %v1231_v42 = vld [vmem:[%s2079_s4 + $0x2] ss:$0 sm:$0xff] }
  0x97   : > { %1290 = vmatprep.subr.bf16.mxu1 %v1661_v0  ;;  %1282 = vmatprep.subr.bf16.mxu0 %v1661_v0  ;;  %v1442_v25 = vld [vmem:[#allocation9 + $0x28] sm:$0xff]   ;;  %s1666_s24 = smov 8   ;;  %s1667_s7 = smov 16   ;;  %vm763_vm4 = vcmask 130112   ;;  %vm879_vm5 = vcmask 195712   ;;  %vm995_vm6 = vcmask 261312  }
  0x98   : > { %s1668_s27 = smov 24   ;;  %s1249_s16 = sshll.u32 %s1790_s9, 7 }
  0x99   : > { %s325_s17 = scalar_lea.vmem [#allocation11], %s1914_s26  ;;  %s2121_s11 = sld [smem:[#allocation22_spill]] }
  0x9a   : > { %1291 = vmatpush3.bf16.msra.mxu1 %v1439_v3  ;;  %1283 = vmatpush3.bf16.msra.mxu0 %v1440_v5  ;;  %s1082_s6 = sshll.u32 %s325_s17, 4  ;;  %s1069_s9 = scalar_lea.sflag [#allocation5], %s1911_s13  ;;  %s2032_s6 = int_to_ptr.vmem [resolvable:$true] %s1082_s6 }
  0x9b   : > { %1304 = vmatprep.subr.bf16.mxu1 %v1661_v0  ;;  %1296 = vmatprep.subr.bf16.mxu0 %v1661_v0  ;;  %s1579_s26 = scalar_lea.vmem %s2032_s6, 128  ;;  %p2122_p9 = scmp.ne.s32.totalorder %s2108_s8, 0 }
  0x9c   : > { %p1580_p4 = scmp.ne.s32.totalorder %s2032_s6, %s1579_s26  ;;  %s1669_s14 = smov [#allocation11]  }
  0x9d   : > { %1293 = vmatmul.mubr.msk.bf16.vlgmr.msra.gmra.mrb[0].mxu1 %vm356_vm1, %v330_v7  ;;  %1285 = vmatmul.mubr.msk.bf16.vlgmr.msra.gmra.mrb[0].mxu0 %vm356_vm1, %v328_v8  ;;  %s1583_s21 = sshll.u32 %s1669_s14, 4  ;;  %s1584_s21 = int_to_ptr.vmem [resolvable:$false] %s1583_s21 }
  0x9e   : > { %1306 = vmatprep.mubr.msk.bf16.mxu1 %vm1662_vm0, %v1661_v0  ;;  %1300 = vmatprep.mubr.msk.bf16.mxu0 %vm1662_vm0, %v1661_v0  ;;  %p1581_p12 = pnand %p1580_p4, %p2122_p9  ;;  %s1585_s5 = scalar_lea.vmem %s1584_s21, 256 }
  0x9f   : > { %1297 = vmatpush3.bf16.msra.mxu0 %v1441_v24  ;;  %s2030_s15 = scalar_lea.hbm %s2121_s11, %s1249_s16  ;;  %p1586_p3 = scmp.lt.s32.totalorder %s2032_s6, %s1584_s21 }
  0xa0   : > { %1298 = vmatprep.subr.bf16.mxu0 %v1661_v0  ;;  %p1582_p6 = pneg %p1581_p12  ;;  %p1587_p5 = scmp.lt.s32.totalorder %s1585_s5, %s1579_s26 }
  0xa2   : > { %p1588_p7 = por %p1587_p5, %p1586_p3 }
  0xa3   : > { %1299 = vmatpush3.bf16.msra.mxu0 %v1442_v25 }
  0xa4   : > { %1310 = vmatprep.subr.bf16.mxu0 %v1661_v0  ;;  %p1589_p11 = pnand %p1588_p7, %p1582_p6 }
  0xa6   : > { %1301 = vmatmul.mubr.msk.bf16.vlgmr.msra.gmra.mrb[4].mxu0 %vm356_vm1, %v332_v27 }
  0xa7   : > { %1312 = vmatprep.mubr.msk.bf16.mxu0 %vm1662_vm0, %v1661_v0 }
 0x170   : > { %v462_v11 = vpop.f32.mrb[0].mxu1  ;;  %v394_v14 = vpop.f32.mrb[0].mxu0 }
 0x171   : > { %v463_v12 = vadd.f32 %v1226_v9, %v462_v11  ;;  %v1294_v13 = vpop.f32.mrb[1].mxu1  ;;  %v395_v16 = vadd.f32 %v1221_v10, %v394_v14  ;;  %v1286_v17 = vpop.f32.mrb[1].mxu0 }
 0x172   : > { %v465_v15 = vpop.f32.mrb[2].mxu1  ;;  %v397_v20 = vpop.f32.mrb[2].mxu0 }
 0x173   : > { %v537_v18 = vpack.c.bf16 %v463_v12, %v463_v12  ;;  %v1295_v19 = vpop.f32.mrb[3].mxu1  ;;  %v1287_v21 = vpop.f32.mrb[3].mxu0  ;;  %v536_v22 = vpack.c.bf16 %v395_v16, %v395_v16 }
 0x175   : > { %767 = vrot.lane.b32.xlu1 %v537_v18, %s1663_s22  ;;  %650 = vrot.lane.b32.xlu0 %v537_v18, %s1664_s25  ;;  %v544_v23 = vsel %vm539_vm2, %v537_v18, 0 }
 0x176   : > { %1305 = vmatpush3.bf16.xpose.msra.mxu1 %v544_v23 }
 0x177   : > { %1316 = vmatprep.subr.bf16.mxu1 %v1661_v0 }
 0x179   : > { %765 = vrot.lane.b32.xlu1 %v536_v22, %s1663_s22  ;;  %647 = vrot.lane.b32.xlu0 %v536_v22, %s1664_s25  ;;  %v530_v43 = vpop.f32.mrb[4].mxu0 }
 0x17a   : > { %v531_v44 = vadd.f32 %v1231_v42, %v530_v43  ;;  %v1302_v45 = vpop.f32.mrb[5].mxu0 }
 0x17b   : > { %v533_v46 = vpop.f32.mrb[6].mxu0 }
 0x17c   : > { %v538_v47 = vpack.c.bf16 %v531_v44, %v531_v44  ;;  %v1303_v48 = vpop.f32.mrb[7].mxu0 }
 0x17d   : > { %881 = vrot.lane.b32.xlu1 %v536_v22, %s1665_s28  ;;  %883 = vrot.lane.b32.xlu0 %v537_v18, %s1665_s28 }
 0x17e   : > { %1307 = vmatmul.mubr.msk.bf16.vlgmr.msra.gmra.mrb[4].mxu1 %vm539_vm2, %v536_v22  ;;  %v603_v49 = vsel %vm601_vm3, %v538_v47, 0 }
 0x17f   : > { %1318 = vmatprep.mubr.msk.bf16.mxu1 %vm1662_vm0, %v1661_v0  ;;  %1311 = vmatpush3.bf16.msra.mxu0 %v603_v49 }
 0x180   : > { %1322 = vmatprep.subr.bf16.mxu0 %v1661_v0 }
 0x1e7   : > { %v651_v28 = vpop.permute.xlu0 %650  ;;  %v768_v30 = vpop.permute.xlu1 %767 }
 0x1e8   : > { %v656_v29 = vsel %vm539_vm2, %v651_v28, 0  ;;  %v773_v32 = vsel %vm539_vm2, %v768_v30, 0 }
 0x1e9   : > { %1317 = vmatpush3.bf16.xpose.msra.mxu1 %v656_v29 }
 0x1ea   : > { %1328 = vmatprep.subr.bf16.mxu1 %v1661_v0 }
 0x1eb   : > { %v648_v31 = vpop.permute.xlu0 %647  ;;  %v766_v34 = vpop.permute.xlu1 %765 }
 0x1ef   : > { %v884_v33 = vpop.permute.xlu0 %883  ;;  %v882_v36 = vpop.permute.xlu1 %881 }
 0x1f0   : > { %1319 = vmatmul.mubr.msk.bf16.vlgmr.msra.gmra.mrb[8].mxu1 %vm539_vm2, %v648_v31  ;;  %v889_v35 = vsel %vm539_vm2, %v884_v33, 0 }
 0x1f1   : > { %1329 = vmatpush3.bf16.xpose.msra.mxu1 %v773_v32  ;;  %1330 = vmatprep.mubr.msk.bf16.mxu1 %vm1662_vm0, %v1661_v0 }
 0x1f2   : > { %1340 = vmatprep.subr.bf16.mxu1 %v1661_v0 }
 0x1f8   : > { %1331 = vmatmul.mubr.msk.bf16.vlgmr.msra.gmra.mrb[12].mxu1 %vm539_vm2, %v766_v34 }
 0x1f9   : > { %1341 = vmatpush3.bf16.xpose.msra.mxu1 %v889_v35  ;;  %1342 = vmatprep.mubr.msk.bf16.mxu1 %vm1662_vm0, %v1661_v0 }
 0x1fa   : > { %1352 = vmatprep.subr.bf16.mxu1 %v1661_v0 }
 0x200   : > { %1343 = vmatmul.mubr.msk.bf16.vlgmr.msra.gmra.mrb[16].mxu1 %vm539_vm2, %v882_v36 }
 0x201   : > { %1356 = vmatprep.mubr.msk.bf16.mxu1 %vm1662_vm0, %v1661_v0 }
 0x251   : > { %v580_v37 = vpop.f32.mrb[4].mxu1 }
 0x252   : > { %v1308_v38 = vpop.f32.mrb[5].mxu1  ;;  %v586_v39 = vsel %vm539_vm2, %v580_v37, -inf }
 0x253   : > { %587 = vmax.xlane.f32.xlu0 %v586_v39  ;;  %v583_v40 = vpop.f32.mrb[6].mxu1 }
 0x254   : > { %v1309_v41 = vpop.f32.mrb[7].mxu1 }
 0x2c3   : > { %v692_v50 = vpop.f32.mrb[8].mxu1 }
 0x2c4   : > { %v1320_v51 = vpop.f32.mrb[9].mxu1  ;;  %v698_v52 = vsel %vm539_vm2, %v692_v50, -inf }
 0x2c5   : > { %699 = vmax.xlane.f32.xlu1 %v698_v52  ;;  %v695_v53 = vpop.f32.mrb[10].mxu1  ;;  %v1443_v52 = vld [vmem:[#allocation9 + $0x30] sm:$0xff]  }
 0x2c6   : > { %v1321_v54 = vpop.f32.mrb[11].mxu1  ;;  %1353 = vmatpush3.bf16.msra.mxu1 %v1443_v52  ;;  %v1444_v53 = vld [vmem:[#allocation9 + $0x38] sm:$0xff]  }
 0x2c7   : > { %1354 = vmatprep.subr.bf16.mxu1 %v1661_v0 }
 0x2ca   : > { %1355 = vmatpush3.bf16.msra.mxu1 %v1444_v53 }
 0x2cb   : > { %v809_v55 = vpop.f32.mrb[12].mxu1 }
 0x2cc   : > { %v1332_v56 = vpop.f32.mrb[13].mxu1  ;;  %v815_v57 = vsel %vm539_vm2, %v809_v55, -inf }
 0x2cd   : > { %816 = vmax.xlane.f32.xlu0 %v815_v57  ;;  %v812_v58 = vpop.f32.mrb[14].mxu1 }
 0x2ce   : > { %v1333_v59 = vpop.f32.mrb[15].mxu1 }
 0x2d3   : > { %v925_v60 = vpop.f32.mrb[16].mxu1 }
 0x2d4   : > { %v1344_v61 = vpop.f32.mrb[17].mxu1  ;;  %v931_v62 = vsel %vm539_vm2, %v925_v60, -inf }
 0x2d5   : > { %932 = vmax.xlane.f32.xlu0 %v931_v62  ;;  %v928_v63 = vpop.f32.mrb[18].mxu1 }
 0x2d6   : > { %v1345_v1 = vpop.f32.mrb[19].mxu1 }
 0x2e0   : > { %v588_v2 = vpop.xlane.xlu0 %587 }
 0x2e1   : > { %v589_v3 = vsub.f32 %v580_v37, %v588_v2 }
 0x2e3   : > { %v590_v4 = vmul.f32 1.442695, %v589_v3  ;;  %v1244_v3 = vld [vmem:[%s2079_s4 + $0x3] ss:$0 sm:$0xff] }
 0x2e5   : > { %1445 = vpow2.f32 %v590_v4 }
 0x2ef   : > { %v1446_v5 = vpop.eup %1445 }
 0x2f0   : > { %v592_v6 = vsel %vm539_vm2, %v1446_v5, 0.0 }
 0x2f1   : > { %593 = vadd.xlane.f32.xlu1 %v592_v6 }
 0x302   : > { %711 = vrot.lane.b32.xlu1 %v538_v47, %s1664_s25 }
 0x352   : > { %v700_v7 = vpop.xlane.xlu1 %699 }
 0x353   : > { %v701_v8 = vsub.f32 %v692_v50, %v700_v7 }
 0x355   : > { %v702_v9 = vmul.f32 1.442695, %v701_v8 }
 0x357   : > { %1447 = vpow2.f32 %v702_v9 }
 0x35a   : > { %v817_v10 = vpop.xlane.xlu0 %816 }
 0x35b   : > { %v818_v11 = vsub.f32 %v809_v55, %v817_v10 }
 0x35d   : > { %v819_v12 = vmul.f32 1.442695, %v818_v11 }
 0x35f   : > { %1449 = vpow2.f32 %v819_v12 }
 0x361   : > { %v1448_v13 = vpop.eup %1447 }
 0x362   : > { %v933_v14 = vpop.xlane.xlu0 %932  ;;  %v704_v15 = vsel %vm539_vm2, %v1448_v13, 0.0 }
 0x363   : > { %v934_v16 = vsub.f32 %v925_v60, %v933_v14  ;;  %705 = vadd.xlane.f32.xlu0 %v704_v15 }
 0x365   : > { %v935_v17 = vmul.f32 1.442695, %v934_v16 }
 0x367   : > { %1451 = vpow2.f32 %v935_v17 }
 0x369   : > { %v1450_v18 = vpop.eup %1449 }
 0x36a   : > { %v821_v19 = vsel %vm539_vm2, %v1450_v18, 0.0 }
 0x36b   : > { %822 = vadd.xlane.f32.xlu1 %v821_v19 }
 0x371   : > { %v1452_v20 = vpop.eup %1451 }
 0x372   : > { %v937_v21 = vsel %vm539_vm2, %v1452_v20, 0.0 }
 0x373   : > { %938 = vadd.xlane.f32.xlu0 %v937_v21 }
 0x37c   : > { %943 = vrot.lane.b32.xlu1 %v538_v47, %s1665_s28 }
 0x37e   : > { %v594_v22 = vpop.xlane.xlu1 %593 }
 0x37f   : > { %1453 = vrcp.f32 %v594_v22 }
 0x382   : > { %v712_v24 = vpop.permute.xlu1 %711 }
 0x383   : > { %v717_v27 = vsel %vm601_vm3, %v712_v24, 0 }
 0x389   : > { %v1454_v23 = vpop.eup %1453  ;;  %827 = vrot.lane.b32.xlu0 %v538_v47, %s1663_s22 }
 0x38a   : > { %v596_v25 = vmul.f32 %v1454_v23, %v1446_v5 }
 0x38c   : > { %v597_v26 = vpack.c.bf16 %v596_v25, %v596_v25 }
 0x38e   : > { %1313 = vmatmul.mubr.msk.bf16.vlgmr.msra.gmra.mrb[8].mxu0 %vm539_vm2, %v597_v26 }
 0x38f   : > { %1323 = vmatpush3.bf16.msra.mxu0 %v717_v27  ;;  %1324 = vmatprep.mubr.msk.bf16.mxu0 %vm1662_vm0, %v1661_v0 }
 0x390   : > { %1334 = vmatprep.subr.bf16.mxu0 %v1661_v0 }
 0x3f0   : > { %v706_v28 = vpop.xlane.xlu0 %705 }
 0x3f1   : > { %1455 = vrcp.f32 %v706_v28 }
 0x3f8   : > { %v823_v29 = vpop.xlane.xlu1 %822 }
 0x3f9   : > { %1457 = vrcp.f32 %v823_v29 }
 0x3fb   : > { %v1456_v30 = vpop.eup %1455 }
 0x3fc   : > { %v708_v31 = vmul.f32 %v1456_v30, %v1448_v13  ;;  %v944_v38 = vpop.permute.xlu1 %943 }
 0x3fd   : > { %v949_v40 = vsel %vm601_vm3, %v944_v38, 0 }
 0x3fe   : > { %v709_v32 = vpack.c.bf16 %v708_v31, %v708_v31 }
 0x400   : > { %v939_v33 = vpop.xlane.xlu0 %938  ;;  %1325 = vmatmul.mubr.msk.bf16.vlgmr.msra.gmra.mrb[12].mxu0 %vm539_vm2, %v709_v32 }
 0x401   : > { %1459 = vrcp.f32 %v939_v33  ;;  %1336 = vmatprep.mubr.msk.bf16.mxu0 %vm1662_vm0, %v1661_v0 }
 0x403   : > { %v1458_v34 = vpop.eup %1457 }
 0x404   : > { %v825_v35 = vmul.f32 %v1458_v34, %v1450_v18  ;;  %v828_v36 = vpop.permute.xlu0 %827 }
 0x405   : > { %v833_v37 = vsel %vm601_vm3, %v828_v36, 0 }
 0x406   : > { %1335 = vmatpush3.bf16.msra.mxu0 %v833_v37  ;;  %v826_v39 = vpack.c.bf16 %v825_v35, %v825_v35 }
 0x407   : > { %1346 = vmatprep.subr.bf16.mxu0 %v1661_v0 }
 0x409   : > { %1337 = vmatmul.mubr.msk.bf16.vlgmr.msra.gmra.mrb[16].mxu0 %vm539_vm2, %v826_v39 }
 0x40a   : > { %1347 = vmatpush3.bf16.msra.mxu0 %v949_v40  ;;  %1348 = vmatprep.mubr.msk.bf16.mxu0 %vm1662_vm0, %v1661_v0 }
 0x40b   : > { %v1460_v41 = vpop.eup %1459 }
 0x40c   : > { %v941_v42 = vmul.f32 %v1460_v41, %v1452_v20 }
 0x40e   : > { %v942_v43 = vpack.c.bf16 %v941_v42, %v941_v42 }
 0x411   : > { %1349 = vmatmul.mubr.msk.bf16.vlgmr.msra.gmra.mrb[20].mxu0 %vm539_vm2, %v942_v43 }
 0x461   : > { %v639_v44 = vpop.f32.mrb[8].mxu0 }
 0x462   : > { %645 = vst.msk [vmem:[#allocation2] sm:$0xff] %vm539_vm2, %v639_v44  ;;  %v1314_v45 = vpop.f32.mrb[9].mxu0 }
 0x463   : > { %v642_v46 = vpop.f32.mrb[10].mxu0 }
 0x464   : > { %v1315_v47 = vpop.f32.mrb[11].mxu0 }
 0x4d3   : > { %v753_v48 = vpop.f32.mrb[12].mxu0 }
 0x4d4   : > { %760 = vrot.lane.b32.xlu1 %v753_v48, %s1666_s24  ;;  %v1326_v49 = vpop.f32.mrb[13].mxu0 }
 0x4d5   : > { %v756_v50 = vpop.f32.mrb[14].mxu0 }
 0x4d6   : > { %v1327_v51 = vpop.f32.mrb[15].mxu0 }
 0x4dc   : > { %v869_v54 = vpop.f32.mrb[16].mxu0 }
 0x4dd   : > { %876 = vrot.lane.b32.xlu0 %v869_v54, %s1667_s7  ;;  %v1338_v55 = vpop.f32.mrb[17].mxu0 }
 0x4de   : > { %v872_v56 = vpop.f32.mrb[18].mxu0 }
 0x4df   : > { %v1339_v57 = vpop.f32.mrb[19].mxu0 }
 0x4e4   : > { %v985_v58 = vpop.f32.mrb[20].mxu0 }
 0x4e5   : > { %992 = vrot.lane.b32.xlu1 %v985_v58, %s1668_s27  ;;  %v1350_v59 = vpop.f32.mrb[21].mxu0 }
 0x4e6   : > { %v988_v60 = vpop.f32.mrb[22].mxu0 }
 0x4e7   : > { %v1351_v61 = vpop.f32.mrb[23].mxu0 }
 0x546   : > { %v761_v62 = vpop.permute.xlu1 %760 }
 0x547   : > { %764 = vst.msk [vmem:[#allocation2] sm:$0xff] %vm763_vm4, %v761_v62 }
 0x54f   : > { %v877_v0 = vpop.permute.xlu0 %876 }
 0x550   : > { %880 = vst.msk [vmem:[#allocation2] sm:$0xff] %vm879_vm5, %v877_v0 }
 0x557   : > { %v993_v63 = vpop.permute.xlu1 %992 }
 0x558   : > { %996 = vst.msk [vmem:[#allocation2] sm:$0xff] %vm995_vm6, %v993_v63 }
 0x55f   : > { %v997_v1 = vld [vmem:[#allocation2] sm:$0xff] }
 0x560   : > { %v998_v2 = vpack.c.bf16 %v997_v1, %v997_v1 }
 0x562   : > { %1357 = vmatmul.mubr.msk.bf16.vlgmr.msra.gmra.mrb[20].mxu1 %vm356_vm1, %v998_v2 }
 0x635   : > { %v1061_v4 = vpop.f32.mrb[20].mxu1 }
 0x636   : > { %v1062_v5 = vadd.f32 %v1244_v3, %v1061_v4  ;;  %v1358_v6 = vpop.f32.mrb[21].mxu1 }
 0x637   : > { %v1064_v7 = vpop.f32.mrb[22].mxu1 }
 0x638   : > { %v1359_v8 = vpop.f32.mrb[23].mxu1  ;;  %1067 = vst.msk [vmem:[%s325_s17] sm:$0xff] %vm356_vm1, %v1062_v5 }
 0x639   : > { %1592 = shalt.err (!%p1589_p11)
}
 0x63a   : > { %s1593_s13 = scalar_lea.hbm %s2030_s15, 128  ;;  %s1597_s25 = scalar_lea.hbm %s2121_s11, 256 }
 0x63b   : > { %p1594_p0 = scmp.ne.s32.totalorder %s2030_s15, %s1593_s13  ;;  %p1598_p8 = scmp.lt.u32.totalorder %s2030_s15, %s2121_s11 }
 0x63c   : > { %p1599_p1 = scmp.lt.u32.totalorder %s1597_s25, %s1593_s13  ;;  %p1601_p4 = scmp.lt.u32.totalorder %s1593_s13, %s2030_s15 }
 0x63d   : > { %p1595_p13 = pnand %p1594_p0, %p2122_p9 }
 0x63e   : > { %p1600_p2 = por %p1599_p1, %p1598_p8 }
 0x63f   : > { %p1596_p10 = pneg %p1595_p13 }
 0x640   : > { %p1602_p12 = por %p1601_p4, %p1600_p2 }
 0x642   : > { %p1603_p6 = pnand %p1602_p12, %p1596_p10 }
 0x644   : > { %1606 = shalt.err (!%p1603_p6)
}
 0x645   : > { %1370 = dma.vmem_to_hbm [thread:$0]  (%p2122_p9), %s2032_s6, 128, %s2030_s15, %s1069_s9  }
 0x646 PF: > { %s2123_s23 = sld [smem:[#allocation16_spill]]  ;;  %s2124_s24 = sld [smem:[#allocation20_spill]] }
 0x647   : > { %s2125_s7 = sld [smem:[#allocation17_spill]] }
 0x64c   : > { %s1094_s27 = sand.u32 1, %s2123_s23   ;;  %p2126_p3 = scmp.ne.s32.totalorder %s2124_s24, 0 }
 0x64d   : > { %p2127_p5 = scmp.ge.s32.totalorder %s2125_s7, 2  ;;  %s1095_s30 = scalar_lea.sflag [#allocation5], %s1094_s27 }
 0x64f   : > { %p1387_p7 = pnand %p2127_p5, %p2126_p3 }
 0x651   : > { %1636 = dma.done.wait (!%p1387_p7), %s1095_s30, 128  }
 0x652   : > { %1638 = vsyncadd (!%p1387_p7), %s1095_s30, 4294967168  ;;  %s2128_s21 = sld [smem:[#allocation18_spill]]  ;;  %s2129_s12 = sld [smem:[#allocation19_spill]] }
 0x653   : > { %s2130_s18 = smov %s1645_s19  ;;  %s2131_s19 = smov %s1649_s20 }
 0x658   : > { %p22_p11 = scmp.ge.s32.totalorder %s2128_s21, 4   ;;  %s2132_s20 = smov %s2129_s12 }
 0x65a   :  { %24 = sbr.rel (!%p22_p11) target bundleno = 11 (0xb), region = 119 }
 0x661   :  { %1100 = vsyncpa [#allocation4], 1 }
 0x662   :  { %1102 = vsyncpa [#allocation4 + $0x1], 1 }
 0x663   :  { %1103 = vsyncpa [#allocation7], 1 }
 0x664   :  { %1105 = vsyncpa [#allocation7 + $0x1], 1 }
 0x665   :  { %1106 = vsyncpa [#allocation10], 1 }
 0x666   :  { %1107 = vsyncpa [#allocation5], 1 }
 0x667   :  { %1109 = vsyncpa [#allocation5 + $0x1], 1 }

</bundles_post_ra>
